<compile_context>
chip_gen: v5e
topology: v5e:2x2
jax: 0.10.0
libtpu: 0.0.40
codegen_flags: <defaults>
</compile_context>

<pallas_src>
import jax
import jax.numpy as jnp
from jax.experimental import pallas as pl
from jax.experimental.pallas import tpu as pltpu

INPUT_SIZE = 1
HIDDEN = 32


def rnn_kernel(x_ref, h0_ref, p_ref, out_ref, hfin_ref, xwb_ref):
    """h_t = tanh(x_t*Wih^T + b + h_{t-1} @ Whh^T);  out_t = h_t . Wout^T + b_out.

    Shapes inside the kernel (batch-major):
      x_ref   [B, T]          h0_ref [B, H]
      p_ref   [H+4, H]  packed params: rows 0..H-1 = Whh^T, H = Wih^T row,
                         H+1 = b_ih+b_hh, H+2 = Wout row, H+3 = b_out (bcast)
      out_ref [B, T]          hfin_ref [B, H]
      xwb_ref [B, T, H]  VMEM scratch: input term, overwritten in place by h_t
    """
    B, T = x_ref.shape
    H = h0_ref.shape[-1]

    # Unpack the single packed-parameter slab with static (free) slices.
    whh_bf = p_ref[0:H, :].astype(jnp.bfloat16)   # bf16 MXU operand (1 pass/step)
    wih = p_ref[H:H + 1, :]                       # [1, H]
    b = p_ref[H + 1:H + 2, :]                     # [1, H]  (b_ih + b_hh)
    wout = p_ref[H + 2:H + 3, :]                  # [1, H]
    bout = p_ref[H + 3:H + 4, 0:1]                # [1, 1]

    # Input contribution for the whole sequence in one VPU shot:
    # [B,T,1] * [1,H] + [1,H] -> [B,T,H]; keeps it off the serial critical path.
    xwb_ref[...] = x_ref[...][..., None] * wih + b

    # Serial recurrence; t is a Python int so every slice is static.
    h = h0_ref[...]                               # f32 [B, H]
    for t in range(T):
        pre = jnp.dot(h.astype(jnp.bfloat16), whh_bf,
                      preferred_element_type=jnp.float32) + xwb_ref[:, t, :]
        h = jnp.tanh(pre)                         # add/tanh stay f32 (v5e-safe)
        xwb_ref[:, t, :] = h                      # alias: xwb[t] already consumed
    hfin_ref[...] = h.astype(hfin_ref.dtype)

    # Output projection ONCE after the loop: reduce H -> dense [B, T] store.
    proj = jnp.sum(xwb_ref[...] * wout, axis=-1) + bout
    out_ref[...] = proj.astype(out_ref.dtype)


def pack_params(params):
    """One-time prep: pack all RNN/Linear parameters into a single [H+4, H] slab."""
    H = params["w_hh_t"].shape[0]
    wih = params["w_ih_t"].reshape(1, H)                    # (Wih [H,1]).T row
    b = (params["b_ih"] + params["b_hh"]).reshape(1, H)     # fused bias
    wout = params["w_out_t"].reshape(1, H)                  # (Wout [1,H]) row
    bout = jnp.broadcast_to(params["b_out"].reshape(1, 1), (1, H))
    return jnp.concatenate([params["w_hh_t"], wih, b, wout, bout], axis=0)


def rnn_forward(x, h_state, packed_params):
    """x: [B, T, 1] f32, h_state: [1, B, 32] f32, packed_params: [H+4, H] f32.
    Returns (outs [B, T, 1], h_state_out [1, B, 32]) like the PyTorch module."""
    B, T, I = x.shape
    assert I == INPUT_SIZE == 1
    H = packed_params.shape[1]

    x_bt = x[..., 0]                     # [B, T] lane-dense along T; no transpose
    h0 = h_state[0]                      # [B, H]

    vmem = pl.BlockSpec(memory_space=pltpu.MemorySpace.VMEM)

    out_bt, h_fin = pl.pallas_call(
        rnn_kernel,
        out_shape=(jax.ShapeDtypeStruct((B, T), x.dtype),
                   jax.ShapeDtypeStruct((B, H), x.dtype)),
        in_specs=[vmem, vmem, vmem],
        out_specs=(vmem, vmem),
        scratch_shapes=[pltpu.VMEM((B, T, H), jnp.float32)],   # xwb / h history
    )(x_bt, h0, packed_params)

    return out_bt[..., None], h_fin[None]          # [B,T,1], [1,B,H]


def init_params(key, input_size=INPUT_SIZE, hidden=HIDDEN):
    """Deterministic init mimicking PyTorch's uniform(-1/sqrt(H), 1/sqrt(H))."""
    ks = jax.random.split(key, 6)
    bound = 1.0 / jnp.sqrt(jnp.float32(hidden))
    u = lambda k, shape: jax.random.uniform(k, shape, jnp.float32, -bound, bound)
    return {
        "w_ih_t": u(ks[0], (input_size, hidden)),   # (Wih [H,I]).T
        "w_hh_t": u(ks[1], (hidden, hidden)),       # (Whh [H,H]).T
        "b_ih":   u(ks[2], (hidden,)),
        "b_hh":   u(ks[3], (hidden,)),
        "w_out_t": u(ks[4], (hidden, 1)),           # (Wout [1,H]).T
        "b_out":  u(ks[5], (1,)),
    }


def ref_forward(x, h_state, params):
    """Pure-JAX f32 reference replicating the PyTorch forward exactly."""
    B, T, I = x.shape
    h = h_state[0]
    outs = []
    for t in range(T):
        h = jnp.tanh(x[:, t, :] @ params["w_ih_t"] + params["b_ih"]
                     + h @ params["w_hh_t"] + params["b_hh"])
        outs.append(h @ params["w_out_t"] + params["b_out"])
    return jnp.stack(outs, axis=1), h[None]


if __name__ == "__main__":
    B, T = 2, 8
    key = jax.random.PRNGKey(0)
    k_x, k_h, k_p = jax.random.split(key, 3)

    x = jax.random.normal(k_x, (B, T, INPUT_SIZE), jnp.float32)
    h_state = jax.random.normal(k_h, (1, B, HIDDEN), jnp.float32)
    params = init_params(k_p)
    packed = pack_params(params)         # one-time parameter packing

    outs, h_out = rnn_forward(x, h_state, packed)
    outs = jax.block_until_ready(outs)
    h_out = jax.block_until_ready(h_out)

    outs_ref, h_ref = ref_forward(x, h_state, params)
    assert outs.shape == (B, T, 1) and h_out.shape == (1, B, HIDDEN)
    # bf16 MXU operands (per perf review) -> approximate, not 1e-5, f32 parity.
    assert jnp.allclose(outs, outs_ref, atol=3e-2, rtol=3e-2)
    assert jnp.allclose(h_out, h_ref, atol=3e-2, rtol=3e-2)

    print("KERNEL_OK")
</pallas_src>

<mosaic_0001>
module attributes {stable_mosaic.version = 11 : i64} {
  func.func @rnn_kernel(%arg0: memref<2x8xf32, #tpu.memory_space<vmem>>, %arg1: memref<2x32xf32, #tpu.memory_space<vmem>>, %arg2: memref<36x32xf32, #tpu.memory_space<vmem>>, %arg3: memref<2x8xf32, #tpu.memory_space<vmem>>, %arg4: memref<2x32xf32, #tpu.memory_space<vmem>>, %arg5: memref<2x8x32xf32, #tpu.memory_space<vmem>>) attributes {dimension_semantics = [], scalar_prefetch = 0 : i64, scratch_operands = 1 : i64, tpu.core_type = #tpu.core_type<tc>} {
    %c0 = arith.constant 0 : index
    %c0_0 = arith.constant 0 : index
    %0 = vector.load %arg2[%c0, %c0_0] : memref<36x32xf32, #tpu.memory_space<vmem>>, vector<32x32xf32>
    %1 = arith.truncf %0 : vector<32x32xf32> to vector<32x32xbf16>
    %c32 = arith.constant 32 : index
    %c0_1 = arith.constant 0 : index
    %2 = vector.load %arg2[%c32, %c0_1] : memref<36x32xf32, #tpu.memory_space<vmem>>, vector<1x32xf32>
    %c33 = arith.constant 33 : index
    %c0_2 = arith.constant 0 : index
    %3 = vector.load %arg2[%c33, %c0_2] : memref<36x32xf32, #tpu.memory_space<vmem>>, vector<1x32xf32>
    %c34 = arith.constant 34 : index
    %c0_3 = arith.constant 0 : index
    %4 = vector.load %arg2[%c34, %c0_3] : memref<36x32xf32, #tpu.memory_space<vmem>>, vector<1x32xf32>
    %c35 = arith.constant 35 : index
    %c0_4 = arith.constant 0 : index
    %5 = vector.load %arg2[%c35, %c0_4] : memref<36x32xf32, #tpu.memory_space<vmem>>, vector<1x1xf32>
    %c0_5 = arith.constant 0 : index
    %c0_6 = arith.constant 0 : index
    %6 = vector.load %arg0[%c0_5, %c0_6] : memref<2x8xf32, #tpu.memory_space<vmem>>, vector<2x8xf32>
    %7 = vector.shape_cast %6 : vector<2x8xf32> to vector<2x8x1xf32>
    %8 = vector.shape_cast %2 : vector<1x32xf32> to vector<1x1x32xf32>
    %9 = vector.broadcast %7 : vector<2x8x1xf32> to vector<2x8x32xf32>
    %10 = vector.broadcast %8 : vector<1x1x32xf32> to vector<2x8x32xf32>
    %11 = arith.mulf %9, %10 : vector<2x8x32xf32>
    %12 = vector.shape_cast %3 : vector<1x32xf32> to vector<1x1x32xf32>
    %13 = vector.broadcast %12 : vector<1x1x32xf32> to vector<2x8x32xf32>
    %14 = arith.addf %11, %13 : vector<2x8x32xf32>
    %c0_7 = arith.constant 0 : index
    %c0_8 = arith.constant 0 : index
    %c0_9 = arith.constant 0 : index
    %15 = vector.load %arg5[%c0_7, %c0_8, %c0_9] : memref<2x8x32xf32, #tpu.memory_space<vmem>>, vector<2x8x32xf32>
    tpu.vector_store %arg5[%c0_7, %c0_8, %c0_9], %14 {strides = array<i32>} : memref<2x8x32xf32, #tpu.memory_space<vmem>>, vector<2x8x32xf32>,
    %c0_10 = arith.constant 0 : index
    %c0_11 = arith.constant 0 : index
    %16 = vector.load %arg1[%c0_10, %c0_11] : memref<2x32xf32, #tpu.memory_space<vmem>>, vector<2x32xf32>
    %17 = arith.truncf %16 : vector<2x32xf32> to vector<2x32xbf16>
    %cst = arith.constant dense<0.000000e+00> : vector<2x32xf32>
    %18 = tpu.matmul %17, %1, %cst {dimension_numbers = #tpu.dot_dimension_numbers<[1], [0], [0], [1], [0, 0, 1, 1], [], []>} : vector<2x32xbf16>, vector<32x32xbf16>, vector<2x32xf32> -> vector<2x32xf32>
    %c0_12 = arith.constant 0 : index
    %c0_13 = arith.constant 0 : index
    %c0_14 = arith.constant 0 : index
    %19 = vector.load %arg5[%c0_12, %c0_13, %c0_14] : memref<2x8x32xf32, #tpu.memory_space<vmem>>, vector<2x1x32xf32>
    %20 = vector.shape_cast %19 : vector<2x1x32xf32> to vector<2x32xf32>
    %21 = arith.addf %18, %20 : vector<2x32xf32>
    %22 = math.tanh %21 : vector<2x32xf32>
    %c0_15 = arith.constant 0 : index
    %c0_16 = arith.constant 0 : index
    %c0_17 = arith.constant 0 : index
    %23 = vector.load %arg5[%c0_15, %c0_16, %c0_17] : memref<2x8x32xf32, #tpu.memory_space<vmem>>, vector<2x1x32xf32>
    %24 = vector.shape_cast %23 : vector<2x1x32xf32> to vector<2x32xf32>
    %25 = vector.shape_cast %22 : vector<2x32xf32> to vector<2x1x32xf32>
    tpu.vector_store %arg5[%c0_15, %c0_16, %c0_17], %25 {strides = array<i32>} : memref<2x8x32xf32, #tpu.memory_space<vmem>>, vector<2x1x32xf32>,
    %26 = arith.truncf %22 : vector<2x32xf32> to vector<2x32xbf16>
    %cst_18 = arith.constant dense<0.000000e+00> : vector<2x32xf32>
    %27 = tpu.matmul %26, %1, %cst_18 {dimension_numbers = #tpu.dot_dimension_numbers<[1], [0], [0], [1], [0, 0, 1, 1], [], []>} : vector<2x32xbf16>, vector<32x32xbf16>, vector<2x32xf32> -> vector<2x32xf32>
    %c0_19 = arith.constant 0 : index
    %c1 = arith.constant 1 : index
    %c0_20 = arith.constant 0 : index
    %28 = vector.load %arg5[%c0_19, %c1, %c0_20] : memref<2x8x32xf32, #tpu.memory_space<vmem>>, vector<2x1x32xf32>
    %29 = vector.shape_cast %28 : vector<2x1x32xf32> to vector<2x32xf32>
    %30 = arith.addf %27, %29 : vector<2x32xf32>
    %31 = math.tanh %30 : vector<2x32xf32>
    %c0_21 = arith.constant 0 : index
    %c1_22 = arith.constant 1 : index
    %c0_23 = arith.constant 0 : index
    %32 = vector.load %arg5[%c0_21, %c1_22, %c0_23] : memref<2x8x32xf32, #tpu.memory_space<vmem>>, vector<2x1x32xf32>
    %33 = vector.shape_cast %32 : vector<2x1x32xf32> to vector<2x32xf32>
    %34 = vector.shape_cast %31 : vector<2x32xf32> to vector<2x1x32xf32>
    tpu.vector_store %arg5[%c0_21, %c1_22, %c0_23], %34 {strides = array<i32>} : memref<2x8x32xf32, #tpu.memory_space<vmem>>, vector<2x1x32xf32>,
    %35 = arith.truncf %31 : vector<2x32xf32> to vector<2x32xbf16>
    %cst_24 = arith.constant dense<0.000000e+00> : vector<2x32xf32>
    %36 = tpu.matmul %35, %1, %cst_24 {dimension_numbers = #tpu.dot_dimension_numbers<[1], [0], [0], [1], [0, 0, 1, 1], [], []>} : vector<2x32xbf16>, vector<32x32xbf16>, vector<2x32xf32> -> vector<2x32xf32>
    %c0_25 = arith.constant 0 : index
    %c2 = arith.constant 2 : index
    %c0_26 = arith.constant 0 : index
    %37 = vector.load %arg5[%c0_25, %c2, %c0_26] : memref<2x8x32xf32, #tpu.memory_space<vmem>>, vector<2x1x32xf32>
    %38 = vector.shape_cast %37 : vector<2x1x32xf32> to vector<2x32xf32>
    %39 = arith.addf %36, %38 : vector<2x32xf32>
    %40 = math.tanh %39 : vector<2x32xf32>
    %c0_27 = arith.constant 0 : index
    %c2_28 = arith.constant 2 : index
    %c0_29 = arith.constant 0 : index
    %41 = vector.load %arg5[%c0_27, %c2_28, %c0_29] : memref<2x8x32xf32, #tpu.memory_space<vmem>>, vector<2x1x32xf32>
    %42 = vector.shape_cast %41 : vector<2x1x32xf32> to vector<2x32xf32>
    %43 = vector.shape_cast %40 : vector<2x32xf32> to vector<2x1x32xf32>
    tpu.vector_store %arg5[%c0_27, %c2_28, %c0_29], %43 {strides = array<i32>} : memref<2x8x32xf32, #tpu.memory_space<vmem>>, vector<2x1x32xf32>,
    %44 = arith.truncf %40 : vector<2x32xf32> to vector<2x32xbf16>
    %cst_30 = arith.constant dense<0.000000e+00> : vector<2x32xf32>
    %45 = tpu.matmul %44, %1, %cst_30 {dimension_numbers = #tpu.dot_dimension_numbers<[1], [0], [0], [1], [0, 0, 1, 1], [], []>} : vector<2x32xbf16>, vector<32x32xbf16>, vector<2x32xf32> -> vector<2x32xf32>
    %c0_31 = arith.constant 0 : index
    %c3 = arith.constant 3 : index
    %c0_32 = arith.constant 0 : index
    %46 = vector.load %arg5[%c0_31, %c3, %c0_32] : memref<2x8x32xf32, #tpu.memory_space<vmem>>, vector<2x1x32xf32>
    %47 = vector.shape_cast %46 : vector<2x1x32xf32> to vector<2x32xf32>
    %48 = arith.addf %45, %47 : vector<2x32xf32>
    %49 = math.tanh %48 : vector<2x32xf32>
    %c0_33 = arith.constant 0 : index
    %c3_34 = arith.constant 3 : index
    %c0_35 = arith.constant 0 : index
    %50 = vector.load %arg5[%c0_33, %c3_34, %c0_35] : memref<2x8x32xf32, #tpu.memory_space<vmem>>, vector<2x1x32xf32>
    %51 = vector.shape_cast %50 : vector<2x1x32xf32> to vector<2x32xf32>
    %52 = vector.shape_cast %49 : vector<2x32xf32> to vector<2x1x32xf32>
    tpu.vector_store %arg5[%c0_33, %c3_34, %c0_35], %52 {strides = array<i32>} : memref<2x8x32xf32, #tpu.memory_space<vmem>>, vector<2x1x32xf32>,
    %53 = arith.truncf %49 : vector<2x32xf32> to vector<2x32xbf16>
    %cst_36 = arith.constant dense<0.000000e+00> : vector<2x32xf32>
    %54 = tpu.matmul %53, %1, %cst_36 {dimension_numbers = #tpu.dot_dimension_numbers<[1], [0], [0], [1], [0, 0, 1, 1], [], []>} : vector<2x32xbf16>, vector<32x32xbf16>, vector<2x32xf32> -> vector<2x32xf32>
    %c0_37 = arith.constant 0 : index
    %c4 = arith.constant 4 : index
    %c0_38 = arith.constant 0 : index
    %55 = vector.load %arg5[%c0_37, %c4, %c0_38] : memref<2x8x32xf32, #tpu.memory_space<vmem>>, vector<2x1x32xf32>
    %56 = vector.shape_cast %55 : vector<2x1x32xf32> to vector<2x32xf32>
    %57 = arith.addf %54, %56 : vector<2x32xf32>
    %58 = math.tanh %57 : vector<2x32xf32>
    %c0_39 = arith.constant 0 : index
    %c4_40 = arith.constant 4 : index
    %c0_41 = arith.constant 0 : index
    %59 = vector.load %arg5[%c0_39, %c4_40, %c0_41] : memref<2x8x32xf32, #tpu.memory_space<vmem>>, vector<2x1x32xf32>
    %60 = vector.shape_cast %59 : vector<2x1x32xf32> to vector<2x32xf32>
    %61 = vector.shape_cast %58 : vector<2x32xf32> to vector<2x1x32xf32>
    tpu.vector_store %arg5[%c0_39, %c4_40, %c0_41], %61 {strides = array<i32>} : memref<2x8x32xf32, #tpu.memory_space<vmem>>, vector<2x1x32xf32>,
    %62 = arith.truncf %58 : vector<2x32xf32> to vector<2x32xbf16>
    %cst_42 = arith.constant dense<0.000000e+00> : vector<2x32xf32>
    %63 = tpu.matmul %62, %1, %cst_42 {dimension_numbers = #tpu.dot_dimension_numbers<[1], [0], [0], [1], [0, 0, 1, 1], [], []>} : vector<2x32xbf16>, vector<32x32xbf16>, vector<2x32xf32> -> vector<2x32xf32>
    %c0_43 = arith.constant 0 : index
    %c5 = arith.constant 5 : index
    %c0_44 = arith.constant 0 : index
    %64 = vector.load %arg5[%c0_43, %c5, %c0_44] : memref<2x8x32xf32, #tpu.memory_space<vmem>>, vector<2x1x32xf32>
    %65 = vector.shape_cast %64 : vector<2x1x32xf32> to vector<2x32xf32>
    %66 = arith.addf %63, %65 : vector<2x32xf32>
    %67 = math.tanh %66 : vector<2x32xf32>
    %c0_45 = arith.constant 0 : index
    %c5_46 = arith.constant 5 : index
    %c0_47 = arith.constant 0 : index
    %68 = vector.load %arg5[%c0_45, %c5_46, %c0_47] : memref<2x8x32xf32, #tpu.memory_space<vmem>>, vector<2x1x32xf32>
    %69 = vector.shape_cast %68 : vector<2x1x32xf32> to vector<2x32xf32>
    %70 = vector.shape_cast %67 : vector<2x32xf32> to vector<2x1x32xf32>
    tpu.vector_store %arg5[%c0_45, %c5_46, %c0_47], %70 {strides = array<i32>} : memref<2x8x32xf32, #tpu.memory_space<vmem>>, vector<2x1x32xf32>,
    %71 = arith.truncf %67 : vector<2x32xf32> to vector<2x32xbf16>
    %cst_48 = arith.constant dense<0.000000e+00> : vector<2x32xf32>
    %72 = tpu.matmul %71, %1, %cst_48 {dimension_numbers = #tpu.dot_dimension_numbers<[1], [0], [0], [1], [0, 0, 1, 1], [], []>} : vector<2x32xbf16>, vector<32x32xbf16>, vector<2x32xf32> -> vector<2x32xf32>
    %c0_49 = arith.constant 0 : index
    %c6 = arith.constant 6 : index
    %c0_50 = arith.constant 0 : index
    %73 = vector.load %arg5[%c0_49, %c6, %c0_50] : memref<2x8x32xf32, #tpu.memory_space<vmem>>, vector<2x1x32xf32>
    %74 = vector.shape_cast %73 : vector<2x1x32xf32> to vector<2x32xf32>
    %75 = arith.addf %72, %74 : vector<2x32xf32>
    %76 = math.tanh %75 : vector<2x32xf32>
    %c0_51 = arith.constant 0 : index
    %c6_52 = arith.constant 6 : index
    %c0_53 = arith.constant 0 : index
    %77 = vector.load %arg5[%c0_51, %c6_52, %c0_53] : memref<2x8x32xf32, #tpu.memory_space<vmem>>, vector<2x1x32xf32>
    %78 = vector.shape_cast %77 : vector<2x1x32xf32> to vector<2x32xf32>
    %79 = vector.shape_cast %76 : vector<2x32xf32> to vector<2x1x32xf32>
    tpu.vector_store %arg5[%c0_51, %c6_52, %c0_53], %79 {strides = array<i32>} : memref<2x8x32xf32, #tpu.memory_space<vmem>>, vector<2x1x32xf32>,
    %80 = arith.truncf %76 : vector<2x32xf32> to vector<2x32xbf16>
    %cst_54 = arith.constant dense<0.000000e+00> : vector<2x32xf32>
    %81 = tpu.matmul %80, %1, %cst_54 {dimension_numbers = #tpu.dot_dimension_numbers<[1], [0], [0], [1], [0, 0, 1, 1], [], []>} : vector<2x32xbf16>, vector<32x32xbf16>, vector<2x32xf32> -> vector<2x32xf32>
    %c0_55 = arith.constant 0 : index
    %c7 = arith.constant 7 : index
    %c0_56 = arith.constant 0 : index
    %82 = vector.load %arg5[%c0_55, %c7, %c0_56] : memref<2x8x32xf32, #tpu.memory_space<vmem>>, vector<2x1x32xf32>
    %83 = vector.shape_cast %82 : vector<2x1x32xf32> to vector<2x32xf32>
    %84 = arith.addf %81, %83 : vector<2x32xf32>
    %85 = math.tanh %84 : vector<2x32xf32>
    %c0_57 = arith.constant 0 : index
    %c7_58 = arith.constant 7 : index
    %c0_59 = arith.constant 0 : index
    %86 = vector.load %arg5[%c0_57, %c7_58, %c0_59] : memref<2x8x32xf32, #tpu.memory_space<vmem>>, vector<2x1x32xf32>
    %87 = vector.shape_cast %86 : vector<2x1x32xf32> to vector<2x32xf32>
    %88 = vector.shape_cast %85 : vector<2x32xf32> to vector<2x1x32xf32>
    tpu.vector_store %arg5[%c0_57, %c7_58, %c0_59], %88 {strides = array<i32>} : memref<2x8x32xf32, #tpu.memory_space<vmem>>, vector<2x1x32xf32>,
    %c0_60 = arith.constant 0 : index
    %c0_61 = arith.constant 0 : index
    %89 = vector.load %arg4[%c0_60, %c0_61] : memref<2x32xf32, #tpu.memory_space<vmem>>, vector<2x32xf32>
    tpu.vector_store %arg4[%c0_60, %c0_61], %85 {strides = array<i32>} : memref<2x32xf32, #tpu.memory_space<vmem>>, vector<2x32xf32>,
    %c0_62 = arith.constant 0 : index
    %c0_63 = arith.constant 0 : index
    %c0_64 = arith.constant 0 : index
    %90 = vector.load %arg5[%c0_62, %c0_63, %c0_64] : memref<2x8x32xf32, #tpu.memory_space<vmem>>, vector<2x8x32xf32>
    %91 = vector.shape_cast %4 : vector<1x32xf32> to vector<1x1x32xf32>
    %92 = vector.broadcast %91 : vector<1x1x32xf32> to vector<2x8x32xf32>
    %93 = arith.mulf %90, %92 : vector<2x8x32xf32>
    %cst_65 = arith.constant dense<0.000000e+00> : vector<2x8xf32>
    %94 = vector.multi_reduction <add>, %93, %cst_65 [2] : vector<2x8x32xf32> to vector<2x8xf32>
    %95 = vector.broadcast %5 : vector<1x1xf32> to vector<2x8xf32>
    %96 = arith.addf %94, %95 : vector<2x8xf32>
    %c0_66 = arith.constant 0 : index
    %c0_67 = arith.constant 0 : index
    %97 = vector.load %arg3[%c0_66, %c0_67] : memref<2x8xf32, #tpu.memory_space<vmem>>, vector<2x8xf32>
    tpu.vector_store %arg3[%c0_66, %c0_67], %96 {strides = array<i32>} : memref<2x8xf32, #tpu.memory_space<vmem>>, vector<2x8xf32>,
    return
  }
}

</mosaic_0001>

<bundles_post_ra>
// kernel: tpu_custom_call.1
= control target key start
LH: loop header
LB: loop body
LE: loop exit
PB: predicated region body
PF: predicated region fallthrough
CT: control target
= control target key end

     0   :  { %10 = vsyncpa [#allocation4], 0  ;;  %v31_v0 = vlaneseq  ;;  %s543_s0 = inlined_call_operand.vmem [shape: f32[2,8], index: 0, kind: input, shape index: {}]   ;;  %s544_s1 = inlined_call_operand.vmem [shape: f32[2,32], index: 1, kind: input, shape index: {}]   ;;  %s545_s2 = inlined_call_operand.vmem [shape: f32[36,32], index: 2, kind: input, shape index: {}]   ;;  %s546_s3 = inlined_call_operand.hbm [shape: f32[2,8], index: 3, kind: output, shape index: {0}]   ;;  %s547_s4 = inlined_call_operand.hbm [shape: f32[2,32], index: 4, kind: output, shape index: {1}]  }
   0x1   :  { %v21_v1 = vld [vmem:[%s545_s2 + $0x10] sm:$0xff]  ;;  %v22_v2 = vld [vmem:[%s545_s2 + $0x18] sm:$0xff]  ;;  %v19_v3 = vld [vmem:[%s545_s2] sm:$0xff] }
   0x2   :  { %v24_v4 = vpack.c.bf16 %v22_v2, %v21_v1  ;;  %v20_v5 = vld [vmem:[%s545_s2 + $0x8] sm:$0xff]  ;;  %v32_v6 = vshrl.u32 %v31_v0, 7  ;;  %v53_v8 = vld [vmem:[%s544_s1] sm:$0x3] }
   0x3   :  { %v23_v7 = vpack.c.bf16 %v20_v5, %v19_v3 }
   0x4   :  { %72 = vmatpush.bf16.msra.mxu0 %v24_v4  ;;  %103 = vmatpush.bf16.msra.mxu1 %v24_v4 }
   0x5   :  { %369 = vset.pattern.permute.xlu0 %v32_v6  ;;  %133 = vmatpush.bf16.msra.mxu2 %v24_v4 }
   0x6   :  { %11 = vsyncpa [#allocation6], 0  ;;  %v29_v9 = vld [vmem:[%s543_s0] sm:$0x3]  ;;  %163 = vmatpush.bf16.msra.mxu3 %v24_v4  ;;  %v54_v10 = vpack.c.bf16 %v53_v8, %v53_v8  ;;  %vm50_vm0 = vcmask 261120   ;;  %vm60_vm1 = vcmask 1041409  }
   0x7   :  { %v37_v11 = vperm.slane %v29_v9, 1  ;;  %v30_v12 = vperm.slane %v29_v9, 0  ;;  %v370_v13 = vld [vmem:[%s545_s2 + $0x20] ss:$0 sm:$0xff]  ;;  %v371_v14 = vld [vmem:[%s545_s2 + $0x21] ss:$0 sm:$0xff] }
   0x8   :  { %73 = vmatpush.bf16.msra.mxu0 %v23_v7  ;;  %104 = vmatpush.bf16.msra.mxu1 %v23_v7  ;;  %vm83_vm2 = vcmask 253952   ;;  %vm296_vm3 = vcmask 254976   ;;  %s441_s7 = smov [#allocation5]   ;;  %s343_s11 = sshll.u32 %s547_s4, 4  ;;  %vm323_vm4 = vcmask 58368   ;;  %s344_s11 = int_to_ptr.hbm [resolvable:$true] %s343_s11 }
   0x9   :  { %134 = vmatpush.bf16.msra.mxu2 %v23_v7  ;;  %s341_s8 = sshll.u32 %s441_s7, 4  ;;  %s442_s12 = smov [#allocation3]   ;;  %s342_s8 = int_to_ptr.vmem [resolvable:$true] %s341_s8 }
   0xa   :  { %164 = vmatpush.bf16.msra.mxu3 %v23_v7  ;;  %s330_s13 = sshll.u32 %s442_s12, 4  ;;  %s332_s4 = sshll.u32 %s546_s3, 4  ;;  %s331_s13 = int_to_ptr.vmem [resolvable:$true] %s330_s13  ;;  %s333_s4 = int_to_ptr.hbm [resolvable:$true] %s332_s4 }
   0xb   :  { %357 = vmatmul.msk.bf16.vlgmr.msra.gmra.mxu0 %vm50_vm0, %v54_v10 }
   0xc   :  { %193 = vmatpush.bf16.msrb.mxu0 %v24_v4  ;;  %223 = vmatpush.bf16.msrb.mxu1 %v24_v4 }
   0xd   :  { %253 = vmatpush.bf16.msrb.mxu2 %v24_v4  ;;  %42 = vperm.xlu0 %369, %v37_v11  }
   0xe   :  { %283 = vmatpush.bf16.msrb.mxu3 %v24_v4 }
  0x10   :  { %194 = vmatpush.bf16.msrb.mxu0 %v23_v7  ;;  %224 = vmatpush.bf16.msrb.mxu1 %v23_v7 }
  0x11   :  { %254 = vmatpush.bf16.msrb.mxu2 %v23_v7 }
  0x12   :  { %284 = vmatpush.bf16.msrb.mxu3 %v23_v7 }
  0x15   :  { %35 = vperm.xlu0 %369, %v30_v12  }
  0x7f   :  { %v43_v15 = vpop.permute.xlu0 %42 }
  0x80   :  { %v46_v16 = vmul.f32 %v370_v13, %v43_v15 }
  0x82   :  { %v49_v17 = vadd.f32 %v371_v14, %v46_v16 }
  0x84   :  { %52 = vst.msk [vmem:[#allocation2 + $0x8] sm:$0xff] %vm50_vm0, %v49_v17 }
  0x87   :  { %v36_v18 = vpop.permute.xlu0 %35 }
  0x88   :  { %v45_v19 = vmul.f32 %v370_v13, %v36_v18  ;;  %v75_v20 = vpop.f32.mrf.mxu0 }
  0x8a   :  { %v48_v21 = vadd.f32 %v371_v14, %v45_v19 }
  0x8b   :  { %v56_v22 = vld [vmem:[#allocation2 + $0x8] sm:$0x1]  ;;  %v88_v31 = vld [vmem:[#allocation2 + $0x9] sm:$0x1]  ;;  %v118_v41 = vld [vmem:[#allocation2 + $0xa] sm:$0x1] }
  0x8c   :  { %51 = vst.msk [vmem:[#allocation2] sm:$0xff] %vm50_vm0, %v48_v21  ;;  %v59_v24 = vrot.slane %v56_v22, 7  ;;  %v91_v33 = vrot.slane %v88_v31, 7  ;;  %v121_v43 = vrot.slane %v118_v41, 7  ;;  %v148_v51 = vld [vmem:[#allocation2 + $0xb] sm:$0x1] }
  0x8d   :  { %v151_v53 = vrot.slane %v148_v51, 7  ;;  %v178_v61 = vld [vmem:[#allocation2 + $0xc] sm:$0x1]  ;;  %v208_v8 = vld [vmem:[#allocation2 + $0xd] sm:$0x1] }
  0x8e   :  { %v181_v63 = vrot.slane %v178_v61, 7  ;;  %v211_v10 = vrot.slane %v208_v8, 7  ;;  %v238_v18 = vld [vmem:[#allocation2 + $0xe] sm:$0x1] }
  0x90   :  { %v77_v23 = vpop.f32.mrf.mxu0 }
  0x93   :  { %v55_v25 = vld [vmem:[#allocation2] sm:$0x1]  ;;  %v87_v32 = vld [vmem:[#allocation2 + $0x1] sm:$0x1]  ;;  %v117_v42 = vld [vmem:[#allocation2 + $0x2] sm:$0x1] }
  0x94   :  { %v61_v26 = vsel %vm60_vm1, %v59_v24, %v55_v25  ;;  %v92_v34 = vsel %vm60_vm1, %v91_v33, %v87_v32  ;;  %v122_v44 = vsel %vm60_vm1, %v121_v43, %v117_v42  ;;  %v147_v52 = vld [vmem:[#allocation2 + $0x3] sm:$0x1]  ;;  %v177_v62 = vld [vmem:[#allocation2 + $0x4] sm:$0x1]  ;;  %v207_v9 = vld [vmem:[#allocation2 + $0x5] sm:$0x1] }
  0x95   :  { %v76_v27 = vadd.f32 %v75_v20, %v61_v26  ;;  %v152_v54 = vsel %vm60_vm1, %v151_v53, %v147_v52  ;;  %v182_v1 = vsel %vm60_vm1, %v181_v63, %v177_v62  ;;  %v212_v11 = vsel %vm60_vm1, %v211_v10, %v207_v9  ;;  %v237_v19 = vld [vmem:[#allocation2 + $0x6] sm:$0x1] }
  0x96   :  { %v241_v20 = vrot.slane %v238_v18, 7 }
  0x97   :  { %373 = vtanh.f32 %v76_v27 }
  0x98   :  { %v242_v21 = vsel %vm60_vm1, %v241_v20, %v237_v19 }
  0x9d   :  { %v374_v28 = vpop.eup %373 }
  0x9e   :  { %v81_v29 = vrot.slane %v374_v28, 1  ;;  %84 = vst.msk [vmem:[#allocation2] sm:$0x1] %vm83_vm2, %v374_v28  ;;  %v86_v30 = vpack.c.bf16 %v374_v28, %v374_v28  ;;  %v268_v28 = vld [vmem:[#allocation2 + $0xf] sm:$0x1] }
  0x9f   :  { %v271_v31 = vrot.slane %v268_v28, 7 }
  0xa0   :  { %85 = vst.msk [vmem:[#allocation2 + $0x8] sm:$0x1] %vm83_vm2, %v81_v29  ;;  %358 = vmatmul.msk.bf16.vlgmr.msra.gmra.mxu1 %vm50_vm0, %v86_v30  ;;  %v267_v29 = vld [vmem:[#allocation2 + $0x7] sm:$0x1]  ;;  %v28_v30 = vld [vmem:[%s545_s2 + $0x23] sm:$0x1] }
  0xa1   :  { %365 = vpush %v28_v30  ;;  %v272_v32 = vsel %vm60_vm1, %v271_v31, %v267_v29 }
 0x11d   :  { %v106_v35 = vpop.f32.mrf.mxu1 }
 0x11e   :  { %v107_v36 = vadd.f32 %v106_v35, %v92_v34 }
 0x120   :  { %375 = vtanh.f32 %v107_v36 }
 0x125   :  { %v108_v37 = vpop.f32.mrf.mxu1 }
 0x126   :  { %v376_v38 = vpop.eup %375 }
 0x127   :  { %v112_v39 = vrot.slane %v376_v38, 1  ;;  %114 = vst.msk [vmem:[#allocation2 + $0x1] sm:$0x1] %vm83_vm2, %v376_v38  ;;  %v116_v40 = vpack.c.bf16 %v376_v38, %v376_v38  ;;  %v372_v38 = vld [vmem:[%s545_s2 + $0x22] ss:$0 sm:$0xff]  ;;  %s366_s2 = spop %365 }
 0x129   :  { %115 = vst.msk [vmem:[#allocation2 + $0x9] sm:$0x1] %vm83_vm2, %v112_v39  ;;  %359 = vmatmul.msk.bf16.vlgmr.msra.gmra.mxu2 %vm50_vm0, %v116_v40 }
 0x1ac   :  { %v136_v45 = vpop.f32.mrf.mxu2 }
 0x1ad   :  { %v137_v46 = vadd.f32 %v136_v45, %v122_v44 }
 0x1af   :  { %377 = vtanh.f32 %v137_v46  ;;  %v311_v46 = vstv %s366_s2 }
 0x1b4   :  { %v138_v47 = vpop.f32.mrf.mxu2 }
 0x1b5   :  { %v378_v48 = vpop.eup %377  ;;  %v318_v47 = vand.u32 127, %v31_v0 }
 0x1b6   :  { %v142_v49 = vrot.slane %v378_v48, 1  ;;  %144 = vst.msk [vmem:[#allocation2 + $0x2] sm:$0x1] %vm83_vm2, %v378_v48  ;;  %v146_v50 = vpack.c.bf16 %v378_v48, %v378_v48 }
 0x1b8   :  { %145 = vst.msk [vmem:[#allocation2 + $0xa] sm:$0x1] %vm83_vm2, %v142_v49  ;;  %360 = vmatmul.msk.bf16.vlgmr.msra.gmra.mxu3 %vm50_vm0, %v146_v50 }
 0x23b   :  { %v166_v55 = vpop.f32.mrf.mxu3 }
 0x23c   :  { %v167_v56 = vadd.f32 %v166_v55, %v152_v54 }
 0x23e   :  { %379 = vtanh.f32 %v167_v56 }
 0x243   :  { %v168_v57 = vpop.f32.mrf.mxu3 }
 0x244   :  { %v380_v58 = vpop.eup %379 }
 0x245   :  { %v172_v59 = vrot.slane %v380_v58, 1  ;;  %174 = vst.msk [vmem:[#allocation2 + $0x3] sm:$0x1] %vm83_vm2, %v380_v58  ;;  %v176_v60 = vpack.c.bf16 %v380_v58, %v380_v58 }
 0x247   :  { %175 = vst.msk [vmem:[#allocation2 + $0xb] sm:$0x1] %vm83_vm2, %v172_v59  ;;  %361 = vmatmul.msk.bf16.vlgmr.msrb.gmra.mxu0 %vm50_vm0, %v176_v60 }
 0x2c4   :  { %v196_v2 = vpop.f32.mrf.mxu0 }
 0x2c5   :  { %v197_v3 = vadd.f32 %v196_v2, %v182_v1 }
 0x2c7   :  { %381 = vtanh.f32 %v197_v3 }
 0x2cc   :  { %v198_v4 = vpop.f32.mrf.mxu0 }
 0x2cd   :  { %v382_v5 = vpop.eup %381 }
 0x2ce   :  { %v202_v6 = vrot.slane %v382_v5, 1  ;;  %204 = vst.msk [vmem:[#allocation2 + $0x4] sm:$0x1] %vm83_vm2, %v382_v5  ;;  %v206_v7 = vpack.c.bf16 %v382_v5, %v382_v5 }
 0x2d0   :  { %205 = vst.msk [vmem:[#allocation2 + $0xc] sm:$0x1] %vm83_vm2, %v202_v6  ;;  %362 = vmatmul.msk.bf16.vlgmr.msrb.gmra.mxu1 %vm50_vm0, %v206_v7 }
 0x34d   :  { %v226_v12 = vpop.f32.mrf.mxu1 }
 0x34e   :  { %v227_v13 = vadd.f32 %v226_v12, %v212_v11 }
 0x350   :  { %383 = vtanh.f32 %v227_v13 }
 0x355   :  { %v228_v14 = vpop.f32.mrf.mxu1 }
 0x356   :  { %v384_v15 = vpop.eup %383 }
 0x357   :  { %v232_v16 = vrot.slane %v384_v15, 1  ;;  %234 = vst.msk [vmem:[#allocation2 + $0x5] sm:$0x1] %vm83_vm2, %v384_v15  ;;  %v236_v17 = vpack.c.bf16 %v384_v15, %v384_v15 }
 0x359   :  { %235 = vst.msk [vmem:[#allocation2 + $0xd] sm:$0x1] %vm83_vm2, %v232_v16  ;;  %363 = vmatmul.msk.bf16.vlgmr.msrb.gmra.mxu2 %vm50_vm0, %v236_v17 }
 0x3dc   :  { %v256_v22 = vpop.f32.mrf.mxu2 }
 0x3dd   :  { %v257_v23 = vadd.f32 %v256_v22, %v242_v21 }
 0x3df   :  { %385 = vtanh.f32 %v257_v23 }
 0x3e4   :  { %v258_v24 = vpop.f32.mrf.mxu2 }
 0x3e5   :  { %v386_v25 = vpop.eup %385 }
 0x3e6   :  { %v262_v26 = vrot.slane %v386_v25, 1  ;;  %264 = vst.msk [vmem:[#allocation2 + $0x6] sm:$0x1] %vm83_vm2, %v386_v25  ;;  %v266_v27 = vpack.c.bf16 %v386_v25, %v386_v25 }
 0x3e8   :  { %265 = vst.msk [vmem:[#allocation2 + $0xe] sm:$0x1] %vm83_vm2, %v262_v26  ;;  %364 = vmatmul.msk.bf16.vlgmr.msrb.gmra.mxu3 %vm50_vm0, %v266_v27 }
 0x46b   :  { %v286_v33 = vpop.f32.mrf.mxu3 }
 0x46c   :  { %v287_v34 = vadd.f32 %v286_v33, %v272_v32 }
 0x46e   :  { %387 = vtanh.f32 %v287_v34 }
 0x473   :  { %v288_v35 = vpop.f32.mrf.mxu3 }
 0x474   :  { %v388_v36 = vpop.eup %387 }
 0x475   :  { %v292_v37 = vrot.slane %v388_v36, 1  ;;  %294 = vst.msk [vmem:[#allocation2 + $0x7] sm:$0x1] %vm83_vm2, %v388_v36 }
 0x476   :  { %297 = vst.msk [vmem:[#allocation5] sm:$0x3] %vm296_vm3, %v388_v36 }
 0x477   :  { %295 = vst.msk [vmem:[#allocation2 + $0xf] sm:$0x1] %vm83_vm2, %v292_v37  ;;  %346 = dma.vmem_to_hbm [thread:$0]  %s342_s8, 32, %s344_s11, [#allocation6]  }
 0x47c   :  { %v298_v39 = vld [vmem:[#allocation2] sm:$0xff] }
 0x47d   :  { %v301_v40 = vmul.f32 %v372_v38, %v298_v39 }
 0x47e   :  { %v299_v42 = vld [vmem:[#allocation2 + $0x8] sm:$0xff] }
 0x47f   :  { %v303_v41 = vsel %vm50_vm0, %v301_v40, 0.0  ;;  %v302_v43 = vmul.f32 %v372_v38, %v299_v42 }
 0x480   :  { %304 = vadd.xlane.f32.xlu1 %v303_v41 }
 0x481   :  { %v306_v44 = vsel %vm50_vm0, %v302_v43, 0.0 }
 0x488   :  { %307 = vadd.xlane.f32.xlu1 %v306_v44 }
 0x4f3   :  { %v305_v45 = vpop.xlane.xlu1 %304 }
 0x4f4   :  { %v313_v48 = vadd.f32 %v311_v46, %v305_v45 }
 0x4f6   :  { %v319_v51 = vperm.slane %v313_v48, %v318_v47 }
 0x4fb   :  { %v308_v49 = vpop.xlane.xlu1 %307 }
 0x4fc   :  { %v314_v50 = vadd.f32 %v311_v46, %v308_v49 }
 0x4fe   :  { %v320_v52 = vperm.slane %v314_v50, %v318_v47 }
 0x500   :  { %v321_v53 = vsel %vm60_vm1, %v320_v52, %v319_v51 }
 0x501   :  { %324 = vst.msk [vmem:[#allocation3] sm:$0x3] %vm323_vm4, %v321_v53 }
 0x502   :  { %335 = dma.vmem_to_hbm [thread:$0]  %s331_s13, 32, %s333_s4, [#allocation4]  }
 0x503   :  { %437 = dma.done.wait [#allocation4], 32  }
 0x504   :  { %438 = vsyncadd [#allocation4], 4294967264 }
 0x505   :  { %439 = dma.done.wait [#allocation6], 32  }
 0x506   :  { %440 = vsyncadd [#allocation6], 4294967264 }
 0x507   :  { %355 = vsyncpa [#allocation4], 1 }
 0x508   :  { %356 = vsyncpa [#allocation6], 1 }

</bundles_post_ra>
